<compile_context>
chip_gen: v5e
topology: v5e:2x2
jax: 0.10.0
libtpu: 0.0.40
codegen_flags: <defaults>
</compile_context>

<pallas_src>
import jax
import jax.numpy as jnp
from jax.experimental import pallas as pl
from jax.experimental.pallas import tpu as pltpu

EMB_DIM = 300   # wordnet embedding dim (emb_dim in the PyTorch module)
EMB_PAD = 384   # EMB_DIM zero-padded to a multiple of 128 (clean MXU K tiles)
HIDDEN = 768    # BERT hidden size (nn.Linear(emb_dim, 768))
KMAX = 4        # max number of wordnet ids per bert token (padded)


def wordnet_kernel(pooled_ref, res_ref, w_ref, b_ref, o_ref):
    """One grid step computes a (TM, HIDDEN) slice of the output.

    pooled_ref: (TM, EMB_PAD)     bf16  pre-pooled wordnet embedding per token
    res_ref:    (TM, HIDDEN)      bf16  residual (input_tensors) slice
    w_ref:      (EMB_PAD, HIDDEN) bf16  resident linear weight (zero pad rows)
    b_ref:      (1, HIDDEN)       f32   resident bias
    o_ref:      (TM, HIDDEN)      bf16  output slice
    """
    # Linear transform on the MXU (bf16 x bf16 -> f32 accumulate).
    out = jnp.dot(pooled_ref[...], w_ref[...],
                  preferred_element_type=jnp.float32)          # (TM, HIDDEN)
    out = out + b_ref[...] + res_ref[...].astype(jnp.float32)
    o_ref[...] = out.astype(o_ref.dtype)


def wordnet_embedding_forward(input_ids, input_tensors, pooled_vocab_bf16,
                              w_bf16, b, *, tm=512):
    """pooled_vocab_bf16: (VOCAB, EMB_PAD) bf16, row v = masked-mean of the
    wordnet embeddings mapped to bert token v (zeros if none), lanes 300..383
    zero.  w_bf16: (EMB_PAD, HIDDEN) bf16 with zero rows beyond EMB_DIM."""
    B, S = input_ids.shape
    M = B * S

    # bf16 blocks need sublane multiples of 16; don't use a tile bigger than
    # the (padded) token count.
    tm = min(tm, pl.cdiv(M, 16) * 16)
    assert tm % 16 == 0, "tm must be a multiple of 16 (bf16 sublane tile)"
    M_pad = pl.cdiv(M, tm) * tm

    flat = input_ids.reshape(M)
    if M_pad != M:
        flat = jnp.pad(flat, (0, M_pad - M))          # pad with token id 0

    # Glue: the data-dependent row gather of the pre-pooled table stays in
    # plain JAX (one 768 B/token bf16 stream).
    # TODO(synk): fold this gather into the kernel per generation (resident
    # table + on-chip gather on v5e/v6e, double-buffered DMA row gather on
    # v7x) to also remove this last HBM round-trip.
    pooled = pooled_vocab_bf16[flat]                          # (M_pad, EMB_PAD)
    res = input_tensors.reshape(M, HIDDEN).astype(jnp.bfloat16)
    if M_pad != M:
        res = jnp.pad(res, ((0, M_pad - M), (0, 0)))
    bias = b.reshape(1, HIDDEN).astype(jnp.float32)

    grid = (M_pad // tm,)

    cost = pl.CostEstimate(
        flops=2 * M_pad * EMB_PAD * HIDDEN,
        transcendentals=0,
        bytes_accessed=(pooled.size * 2 + res.size * 2 + w_bf16.size * 2
                        + bias.size * 4 + M_pad * HIDDEN * 2),
    )

    out = pl.pallas_call(
        wordnet_kernel,
        out_shape=jax.ShapeDtypeStruct((M_pad, HIDDEN), jnp.bfloat16),
        grid_spec=pltpu.PrefetchScalarGridSpec(
            num_scalar_prefetch=0,
            grid=grid,
            in_specs=[
                pl.BlockSpec((tm, EMB_PAD), lambda i: (i, 0)),
                pl.BlockSpec((tm, HIDDEN), lambda i: (i, 0)),
                pl.BlockSpec((EMB_PAD, HIDDEN), lambda i: (0, 0)),  # resident
                pl.BlockSpec((1, HIDDEN), lambda i: (0, 0)),        # resident
            ],
            out_specs=pl.BlockSpec((tm, HIDDEN), lambda i: (i, 0)),
        ),
        compiler_params=pltpu.CompilerParams(
            # Shards the M axis across both TensorCores on v7x; no-op on
            # single-TC v5e/v6e.
            dimension_semantics=("parallel",),
            # ~9 MiB needed at tm=1024; 24 MiB leaves headroom and stays well
            # under v7x's 64 MiB physical VMEM (prev. 64 MiB was 100% of it).
            vmem_limit_bytes=24 * 1024 * 1024),
        cost_estimate=cost,
    )(pooled, res, w_bf16, bias)

    return out[:M].reshape(B, S, HIDDEN)


def ref_forward(input_ids, input_tensors, emb_table, bert2wn_ids,
                bert2wn_mask, w, b):
    """Pure-JAX f32 reference mirroring the PyTorch forward (masked mean,
    zeros for tokens with no wordnet ids, linear transform + residual)."""
    flat = input_ids.reshape(-1)
    m = bert2wn_mask[flat]                                  # (M, KMAX)
    g = emb_table[bert2wn_ids[flat]]                        # (M, KMAX, EMB_DIM)
    summed = jnp.sum(g * m[:, :, None], axis=1)
    cnt = jnp.sum(m, axis=1, keepdims=True)
    wn = summed / jnp.maximum(cnt, 1.0)
    out = wn @ w + b + input_tensors.reshape(-1, HIDDEN)
    return out.reshape(*input_ids.shape, HIDDEN)


if __name__ == "__main__":
    B, S = 2, 12       # M = 24 -> padded to 32 with tm=16 -> 2 grid steps
    VOCAB = 64         # synthetic BERT vocab size for the bert2wn table
    N_ENT = 50         # synthetic kg.n_ent

    key = jax.random.PRNGKey(0)
    k_emb, k_w, k_b, k_ids, k_res = jax.random.split(key, 5)

    # TODO(synk): init_embedding() trains a TransE model over WN18RR; replaced
    # with a deterministic random embedding table (no Pallas equivalent of a
    # training loop / checkpoint load).
    emb_table = jax.random.normal(k_emb, (N_ENT, EMB_DIM), jnp.float32) * 0.02

    # nn.Linear(emb_dim, 768): weight stored as (in, out) for x @ W + b.
    w = jax.random.normal(k_w, (EMB_DIM, HIDDEN), jnp.float32) * 0.02
    b = jax.random.normal(k_b, (HIDDEN,), jnp.float32) * 0.02

    # TODO(synk): bert2wn.json replaced by a deterministic synthetic mapping:
    # token v maps to (v % (KMAX+1)) wordnet ids -> some tokens map to nothing.
    counts = jnp.arange(VOCAB) % (KMAX + 1)                      # (VOCAB,)
    raw_ids = (jnp.arange(VOCAB)[:, None] * 7
               + jnp.arange(KMAX)[None, :] * 3) % N_ENT          # (VOCAB, KMAX)
    bert2wn_mask = (jnp.arange(KMAX)[None, :]
                    < counts[:, None]).astype(jnp.float32)       # (VOCAB, KMAX)
    bert2wn_ids = jnp.where(bert2wn_mask > 0, raw_ids, 0).astype(jnp.int32)

    # --- Host-side preprocessing (embedding + bert2wn are frozen state) -----
    # pooled_vocab[v] = mean of emb rows listed in bert2wn[v] (zeros if empty)
    g = emb_table[bert2wn_ids]                               # (VOCAB, KMAX, 300)
    summed = jnp.sum(g * bert2wn_mask[:, :, None], axis=1)   # (VOCAB, 300)
    cnt = jnp.sum(bert2wn_mask, axis=1, keepdims=True)
    pooled_vocab = summed / jnp.maximum(cnt, 1.0)            # (VOCAB, 300) f32
    pooled_pad = jnp.zeros((VOCAB, EMB_PAD), jnp.float32)
    pooled_pad = pooled_pad.at[:, :EMB_DIM].set(pooled_vocab)
    pooled_vocab_bf16 = pooled_pad.astype(jnp.bfloat16)

    # Contraction dim padded 300 -> 384 with zero rows; bf16 for the MXU.
    w_padded = jnp.zeros((EMB_PAD, HIDDEN), jnp.float32).at[:EMB_DIM].set(w)
    w_bf16 = w_padded.astype(jnp.bfloat16)

    input_ids = jax.random.randint(k_ids, (B, S), 0, VOCAB, jnp.int32)
    input_tensors = jax.random.normal(k_res, (B, S, HIDDEN), jnp.float32)

    # tm=16 at this toy size -> 2 grid steps, exercises the pipeline and the
    # M-padding (24 -> 32) tail path.
    out = wordnet_embedding_forward(input_ids, input_tensors,
                                    pooled_vocab_bf16, w_bf16, b, tm=16)
    out = jax.block_until_ready(out)

    # Fully f32 reference with exact PyTorch semantics; tolerance covers the
    # bf16 pooled-table / weight / residual / output quantization.
    ref = ref_forward(input_ids, input_tensors, emb_table,
                      bert2wn_ids, bert2wn_mask, w, b)
    assert out.shape == (B, S, HIDDEN)
    assert out.dtype == jnp.bfloat16
    assert jnp.allclose(out.astype(jnp.float32), ref, rtol=2e-2, atol=2e-2), \
        "mismatch vs reference"

    print("KERNEL_OK")
</pallas_src>

<mosaic_0001>
module attributes {stable_mosaic.version = 11 : i64} {
  func.func @wordnet_kernel(%arg0: i32, %arg1: memref<16x384xbf16, #tpu.memory_space<vmem>>, %arg2: memref<16x768xbf16, #tpu.memory_space<vmem>>, %arg3: memref<384x768xbf16, #tpu.memory_space<vmem>>, %arg4: memref<1x768xf32, #tpu.memory_space<vmem>>, %arg5: memref<16x768xbf16, #tpu.memory_space<vmem>>) attributes {dimension_semantics = [#tpu.dimension_semantics<parallel>], iteration_bounds = array<i64: 2>, scalar_prefetch = 0 : i64, scratch_operands = 0 : i64, tpu.core_type = #tpu.core_type<tc>, window_params = [{transform_indices = @transform_0, window_bounds = array<i64: 16, 384>}, {transform_indices = @transform_1, window_bounds = array<i64: 16, 768>}, {pipeline_mode = #tpu.pipeline_mode<synchronous>, transform_indices = @transform_2, window_bounds = array<i64: 384, 768>}, {pipeline_mode = #tpu.pipeline_mode<synchronous>, transform_indices = @transform_3, window_bounds = array<i64: 1, 768>}, {transform_indices = @transform_4, window_bounds = array<i64: 16, 768>}]} {
    %c0 = arith.constant 0 : index
    %c0_0 = arith.constant 0 : index
    %0 = vector.load %arg1[%c0, %c0_0] : memref<16x384xbf16, #tpu.memory_space<vmem>>, vector<16x384xbf16>
    %c0_1 = arith.constant 0 : index
    %c0_2 = arith.constant 0 : index
    %1 = vector.load %arg3[%c0_1, %c0_2] : memref<384x768xbf16, #tpu.memory_space<vmem>>, vector<384x768xbf16>
    %cst = arith.constant dense<0.000000e+00> : vector<16x768xf32>
    %2 = tpu.matmul %0, %1, %cst {dimension_numbers = #tpu.dot_dimension_numbers<[1], [0], [0], [1], [0, 0, 1, 1], [], []>} : vector<16x384xbf16>, vector<384x768xbf16>, vector<16x768xf32> -> vector<16x768xf32>
    %c0_3 = arith.constant 0 : index
    %c0_4 = arith.constant 0 : index
    %3 = vector.load %arg4[%c0_3, %c0_4] : memref<1x768xf32, #tpu.memory_space<vmem>>, vector<1x768xf32>
    %4 = vector.broadcast %3 : vector<1x768xf32> to vector<16x768xf32>
    %5 = arith.addf %2, %4 : vector<16x768xf32>
    %c0_5 = arith.constant 0 : index
    %c0_6 = arith.constant 0 : index
    %6 = vector.load %arg2[%c0_5, %c0_6] : memref<16x768xbf16, #tpu.memory_space<vmem>>, vector<16x768xbf16>
    %7 = arith.extf %6 : vector<16x768xbf16> to vector<16x768xf32>
    %8 = arith.addf %5, %7 : vector<16x768xf32>
    %9 = arith.truncf %8 : vector<16x768xf32> to vector<16x768xbf16>
    %c0_7 = arith.constant 0 : index
    %c0_8 = arith.constant 0 : index
    %10 = vector.load %arg5[%c0_7, %c0_8] : memref<16x768xbf16, #tpu.memory_space<vmem>>, vector<16x768xbf16>
    tpu.vector_store %arg5[%c0_7, %c0_8], %9 {strides = array<i32>} : memref<16x768xbf16, #tpu.memory_space<vmem>>, vector<16x768xbf16>,
    return
  }
  func.func @transform_0(%arg0: i32) -> (i32, i32) {
    %c0_i32 = arith.constant 0 : i32
    %c0_i32_0 = arith.constant 0 : i32
    return %arg0, %c0_i32 : i32, i32
  }
  func.func @transform_1(%arg0: i32) -> (i32, i32) {
    %c0_i32 = arith.constant 0 : i32
    %c0_i32_0 = arith.constant 0 : i32
    return %arg0, %c0_i32 : i32, i32
  }
  func.func @transform_2(%arg0: i32) -> (i32, i32) {
    %c0_i32 = arith.constant 0 : i32
    %c0_i32_0 = arith.constant 0 : i32
    %c0_i32_1 = arith.constant 0 : i32
    return %c0_i32, %c0_i32_0 : i32, i32
  }
  func.func @transform_3(%arg0: i32) -> (i32, i32) {
    %c0_i32 = arith.constant 0 : i32
    %c0_i32_0 = arith.constant 0 : i32
    %c0_i32_1 = arith.constant 0 : i32
    return %c0_i32, %c0_i32_0 : i32, i32
  }
  func.func @transform_4(%arg0: i32) -> (i32, i32) {
    %c0_i32 = arith.constant 0 : i32
    %c0_i32_0 = arith.constant 0 : i32
    return %arg0, %c0_i32 : i32, i32
  }
}

</mosaic_0001>

<bundles_post_ra>
// kernel: tpu_custom_call.1
= control target key start
LH: loop header
LB: loop body
LE: loop exit
PB: predicated region body
PF: predicated region fallthrough
CT: control target
= control target key end

     0   :  { %s2934_s0 = inlined_call_operand.hbm [shape: bf16[32,384], index: 0, kind: input, shape index: {}]   ;;  %s2935_s1 = inlined_call_operand.hbm [shape: bf16[32,768], index: 1, kind: input, shape index: {}]   ;;  %s2936_s2 = inlined_call_operand.hbm [shape: bf16[384,768], index: 2, kind: input, shape index: {}]   ;;  %s2937_s3 = inlined_call_operand.hbm [shape: f32[1,768], index: 3, kind: input, shape index: {}]   ;;  %s2938_s4 = inlined_call_operand.hbm [shape: bf16[32,768], index: 4, kind: output, shape index: {}]  }
   0x1   :  { %2941 = sst [smem:[#allocation17_spill]] %s2934_s0 }
   0x2   :  { %2942 = sst [smem:[#allocation18_spill]] %s2936_s2 }
   0x3   :  { %2943 = sst [smem:[#allocation19_spill]] %s2937_s3 }
   0x4   :  { %9 = vsyncpa [#allocation3], 0 }
   0x5   :  { %11 = vsyncpa [#allocation3 + $0x1], 0 }
   0x6   :  { %12 = vsyncpa [#allocation6], 0 }
   0x7   :  { %14 = vsyncpa [#allocation6 + $0x1], 0 }
   0x8   :  { %15 = vsyncpa [#allocation9], 0 }
   0x9   :  { %16 = vsyncpa [#allocation4], 0 }
   0xa   :  { %18 = vsyncpa [#allocation4 + $0x1], 0  ;;  %s2692_s15 = smov 0   ;;  %s2694_s16 = smov 0  }
   0xb   :  { %s2696_s17 = smov 0   ;;  %s2698_s18 = smov 0  }
   0xc LB: > { %s2713_s19 = sadd.s32 4294967295, %s2657_s18   ;;  %s1620_s20 = sadd.s32 4294967294, %s2657_s18   ;;  %s2657_s18 = sphi %s2698_s18, %s2960_s18   ;;  %s2653_s17 = sphi %s2696_s17, %s2959_s17   ;;  %s2649_s16 = sphi %s2694_s16, %s2958_s16   ;;  %s2645_s15 = sphi %s2692_s15, %s2957_s15  }
   0xd   : > { %p44_p0 = scmp.ne.s32.totalorder %s2649_s16, %s2645_s15  ;;  %p45_p1 = scmp.eq.s32.totalorder %s2713_s19, 0 }
   0xe   : > { %p136_p2 = scmp.eq.s32.totalorder %s2713_s19, 1  ;;  %p142_p3 = scmp.eq.s32.totalorder %s1620_s20, 1 }
   0xf   : > { %p2722_p4 = por %p45_p1, %p44_p0  ;;  %p1621_p5 = scmp.ge.s32.totalorder %s2657_s18, 1 }
  0x10   : > { %p2727_p6 = por %p142_p3, %p44_p0  ;;  %p149_p7 = scmp.lt.s32.totalorder %s2657_s18, 3 }
  0x11   : > { %s2946_s2 = sld [smem:[#allocation18_spill]]  ;;  %s2659_s27 = smov [#allocation7]  }
  0x12   : > { %p2735_p8 = pnand %p1621_p5, %p149_p7  ;;  %s162_s28 = sshll.u32 %s2659_s27, 4  ;;  %s163_s28 = int_to_ptr.vmem [resolvable:$true] %s162_s28 }
  0x13   : > { %s2948_s3 = sld [smem:[#allocation19_spill]]  ;;  %s2939_s6 = smov 384  }
  0x14   : > { %p2395_p9 = pneg %p2735_p8  ;;  %s2940_s7 = smov 24  }
  0x15   : > { %s2662_s8 = smov [#allocation8]   ;;  %s2751_s10 = sadd.s32 1, %s2657_s18  }
  0x16   : > { %p2396_p10 = pnand %p2395_p9, %p45_p1  ;;  %s177_s9 = sshll.u32 %s2662_s8, 4  ;;  %s178_s9 = int_to_ptr.vmem [resolvable:$true] %s177_s9 }
  0x17   : > { %s160_s25 = sshll.u32 %s2946_s2, 4  ;;  %s31_s11 = sadd.s32 1, %s2653_s17  ;;  %s161_s25 = int_to_ptr.hbm [resolvable:$true] %s160_s25 }
  0x18   : > { %2398 = dma.hbm_to_vmem [thread:$0]  (!%p2396_p10), %s161_s25, 18432, %s163_s28, [#allocation6], %s2939_s6, %s2939_s6, %s2940_s7  }
  0x19   : > { %s175_s5 = sshll.u32 %s2948_s3, 4  ;;  %s28_s12 = ssub.s32 %s2657_s18, %s2751_s10  ;;  %s176_s5 = int_to_ptr.hbm [resolvable:$true] %s175_s5 }
  0x1a   : > { %2401 = dma.hbm_to_vmem [thread:$0]  (!%p2396_p10), %s176_s5, 96, %s178_s9, [#allocation9]  }
  0x1b   : > { %p38_p12 = scmp.ne.s32.totalorder %s2653_s17, %s2649_s16  ;;  %p29_p13 = scmp.eq.s32.totalorder %s28_s12, 0 }
  0x1c   : > { %p39_p0 = scmp.eq.s32.totalorder %s2657_s18, 0  ;;  %p2415_p5 = scmp.lt.s32.totalorder %s2657_s18, 2 }
  0x1d   : > { %p2761_p3 = por %p136_p2, %p38_p12  ;;  %s2770_s20 = sand.u32 1, %s2653_s17  }
  0x1e   : > { %s2767_s14 = scalar_select %p29_p13, %s2653_s17, %s31_s11  }
  0x1f   : > { %p40_p7 = por %p39_p0, %p38_p12  ;;  %s2374_s23 = smul.u32 24, %s2770_s20 }
  0x20   : > { %2950 = sst [smem:[#allocation16_spill]] %s2767_s14  ;;  %s2375_s24 = smul.u32 24, %s2657_s18 }
  0x21   : > { %p2774_p9 = pnand %p2415_p5, %p40_p7  ;;  %s2952_s0 = sld [smem:[#allocation17_spill]] }
  0x22   : > { %s192_s30 = scalar_lea.vmem [#allocation2], %s2374_s23  ;;  %s211_s9 = sand.u32 1, %s2657_s18  }
  0x23   : > { %s201_s5 = sshll.u32 %s192_s30, 4  ;;  %s189_s11 = scalar_lea.sflag [#allocation3], %s2770_s20  ;;  %s202_s5 = int_to_ptr.vmem [resolvable:$true] %s201_s5 }
  0x24   : > { %p2523_p10 = pneg %p2774_p9 }
  0x27   : > { %s198_s29 = scalar_lea.hbm %s2952_s0, %s2375_s24  ;;  %s2526_s23 = scalar_lea.hbm %s2952_s0, 48 }
  0x28   : > { %s199_s8 = sshll.u32 %s198_s29, 4  ;;  %s200_s8 = int_to_ptr.hbm [resolvable:$true] %s199_s8 }
  0x29   : > { %s2519_s12 = sshra.s32 %s200_s8, 4  ;;  %s2520_s12 = int_to_ptr.hbm [resolvable:$true] %s2519_s12 }
  0x2a   : > { %s2521_s6 = scalar_lea.hbm %s2520_s12, 24  ;;  %p2527_p0 = scmp.lt.s32.totalorder %s2520_s12, %s2952_s0 }
  0x2b   : > { %p2522_p2 = scmp.ne.s32.totalorder %s2520_s12, %s2521_s6  ;;  %p2528_p5 = scmp.lt.s32.totalorder %s2526_s23, %s2521_s6 }
  0x2d   : > { %p2524_p12 = pnand %p2523_p10, %p2522_p2  ;;  %p2529_p7 = por %p2528_p5, %p2527_p0 }
  0x2f   : > { %p2525_p13 = pneg %p2524_p12 }
  0x31   : > { %p2530_p11 = pnand %p2529_p7, %p2525_p13 }
  0x33   : > { %2533 = shalt.err (!%p2530_p11)
}
  0x34   : > { %s2663_s30 = smov 192   ;;  %s2664_s7 = smov 12  }
  0x35   : > { %2405 = dma.hbm_to_vmem [thread:$0]  (!%p2774_p9), %s200_s8, 384, %s202_s5, %s189_s11, %s2663_s30, %s2663_s30, %s2664_s7  }
  0x36   : > { %s2376_s2 = smul.u32 48, %s2770_s20  ;;  %s212_s23 = scalar_lea.sflag [#allocation6], %s211_s9 }
  0x37   : > { %s2377_s3 = smul.u32 48, %s2657_s18  ;;  %s2556_s5 = scalar_lea.hbm %s2935_s1, 96 }
  0x38   : > { %s215_s24 = scalar_lea.vmem [#allocation5], %s2376_s2 }
  0x39   : > { %s221_s14 = scalar_lea.hbm %s2935_s1, %s2377_s3  ;;  %s224_s12 = sshll.u32 %s215_s24, 4  ;;  %s225_s12 = int_to_ptr.vmem [resolvable:$true] %s224_s12 }
  0x3a   : > { %s222_s6 = sshll.u32 %s221_s14, 4  ;;  %s223_s6 = int_to_ptr.hbm [resolvable:$true] %s222_s6 }
  0x3b   : > { %s2549_s29 = sshra.s32 %s223_s6, 4  ;;  %s2550_s29 = int_to_ptr.hbm [resolvable:$true] %s2549_s29 }
  0x3c   : > { %s2551_s0 = scalar_lea.hbm %s2550_s29, 48  ;;  %p2557_p13 = scmp.lt.s32.totalorder %s2550_s29, %s2935_s1 }
  0x3d   : > { %p2552_p11 = scmp.ne.s32.totalorder %s2550_s29, %s2551_s0  ;;  %p2558_p0 = scmp.lt.s32.totalorder %s2556_s5, %s2551_s0 }
  0x3f   : > { %p2554_p2 = pnand %p2552_p11, %p2523_p10  ;;  %p2559_p5 = por %p2558_p0, %p2557_p13 }
  0x41   : > { %p2555_p12 = pneg %p2554_p2 }
  0x43   : > { %p2560_p7 = pnand %p2559_p5, %p2555_p12 }
  0x45   : > { %2563 = shalt.err (!%p2560_p7)
}
  0x46   : > { %s2953_s2 = smov 24   ;;  %s2954_s14 = smov 384  }
  0x47   : > { %2408 = dma.hbm_to_vmem [thread:$0]  (!%p2774_p9), %s223_s6, 768, %s225_s12, %s212_s23, %s2954_s14, %s2954_s14, %s2953_s2  }
  0x48   : > { %236 = sbr.rel (%p2735_p8) target bundleno = 394 (0x18a), region = 36  ;;  %s2818_s9 = sand.u32 (!%p2735_p8), 1, %s2649_s16  }
  0x49   : > { %s2378_s11 = smul.u32 (!%p2735_p8), 24, %s2818_s9  ;;  %s239_s0 = scalar_lea.sflag (!%p2735_p8), [#allocation3], %s2818_s9 }
  0x4b   : > { %s2822_s30 = scalar_lea.vmem (!%p2735_p8), [#allocation2], %s2378_s11 }
  0x4d   : > { %2624 = dma.done.wait (%p2722_p4), %s239_s0, 384  }
  0x4e   : > { %2626 = vsyncadd (%p2722_p4), %s239_s0, 4294966912  ;;  %s248_s26 = sand.u32 1, %s2713_s19   ;;  %s2379_s25 = smul.u32 48, %s2818_s9 }
  0x4f   : > { %s249_s27 = scalar_lea.sflag [#allocation6], %s248_s26 }
  0x50   : > { %s2832_s28 = scalar_lea.vmem [#allocation5], %s2379_s25 }
  0x51   : > { %2628 = dma.done.wait (%p2722_p4), %s249_s27, 768  }
  0x52   : > { %2630 = vsyncadd (%p2722_p4), %s249_s27, 4294966528 }
  0x53   : > { %2632 = dma.done.wait (%p45_p1), [#allocation6], 18432  }
  0x54   : > { %2634 = vsyncadd (%p45_p1), [#allocation6], 4294948864 }
  0x55   : > { %2636 = dma.done.wait (%p45_p1), [#allocation9], 96  }
  0x56   : > { %2638 = vsyncadd (%p45_p1), [#allocation9], 4294967200  ;;  %v1816_v0 = vld [vmem:[#allocation7 + $0x150] sm:$0xf]  ;;  %v2275_v1 = vld [vmem:[#allocation7 + $0x164] sm:$0xf0] }
  0x57   : > { %v2008_v2 = vld [vmem:[#allocation7 + $0x2d0] sm:$0xf]  ;;  %v1817_v3 = vor.u32 %v2275_v1, %v1816_v0  ;;  %v2323_v4 = vld [vmem:[#allocation7 + $0x2e4] sm:$0xf0]  ;;  %v1792_v9 = vld [vmem:[#allocation7 + $0x120] sm:$0xf] }
  0x58   : > { %v2200_v5 = vld [vmem:[#allocation7 + $0x450] sm:$0xf]  ;;  %v2371_v6 = vld [vmem:[#allocation7 + $0x464] sm:$0xf0]  ;;  %v2009_v7 = vor.u32 %v2323_v4, %v2008_v2  ;;  %v2269_v10 = vld [vmem:[#allocation7 + $0x134] sm:$0xf0] }
  0x59   : > { %v2201_v8 = vor.u32 %v2371_v6, %v2200_v5  ;;  %v1984_v11 = vld [vmem:[#allocation7 + $0x2a0] sm:$0xf]  ;;  %1194 = vmatpush.bf16.msra.mxu0 %v1817_v3  ;;  %v1793_v12 = vor.u32 %v2269_v10, %v1792_v9  ;;  %v2317_v13 = vld [vmem:[#allocation7 + $0x2b4] sm:$0xf0]  ;;  %v1768_v18 = vld [vmem:[#allocation7 + $0xf0] sm:$0xf] }
  0x5a   : > { %v2176_v14 = vld [vmem:[#allocation7 + $0x420] sm:$0xf]  ;;  %v2365_v15 = vld [vmem:[#allocation7 + $0x434] sm:$0xf0]  ;;  %1208 = vmatpush.bf16.msra.mxu1 %v2009_v7  ;;  %v1985_v16 = vor.u32 %v2317_v13, %v1984_v11  ;;  %v2263_v19 = vld [vmem:[#allocation7 + $0x104] sm:$0xf0] }
  0x5b   : > { %1222 = vmatpush.bf16.msra.mxu2 %v2201_v8  ;;  %v2177_v17 = vor.u32 %v2365_v15, %v2176_v14  ;;  %v1960_v20 = vld [vmem:[#allocation7 + $0x270] sm:$0xf]  ;;  %v2311_v21 = vld [vmem:[#allocation7 + $0x284] sm:$0xf0]  ;;  %v1769_v24 = vor.u32 %v2263_v19, %v1768_v18  ;;  %v2272_v25 = vld [vmem:[#allocation7 + $0x154] sm:$0xf] }
  0x5c   : > { %v2152_v22 = vld [vmem:[#allocation7 + $0x3f0] sm:$0xf]  ;;  %v2359_v23 = vld [vmem:[#allocation7 + $0x404] sm:$0xf0]  ;;  %v1818_v26 = vld [vmem:[#allocation7 + $0x168] sm:$0xf0]  ;;  %v1961_v27 = vor.u32 %v2311_v21, %v1960_v20 }
  0x5d   : > { %1195 = vmatpush.bf16.msra.mxu0 %v1793_v12  ;;  %v2153_v28 = vor.u32 %v2359_v23, %v2152_v22  ;;  %v1744_v29 = vld [vmem:[#allocation7 + $0xc0] sm:$0xf]  ;;  %v2257_v30 = vld [vmem:[#allocation7 + $0xd4] sm:$0xf0]  ;;  %v1821_v32 = vor.u32 %v2272_v25, %v1818_v26  ;;  %v2266_v36 = vld [vmem:[#allocation7 + $0x124] sm:$0xf] }
  0x5e   : > { %1209 = vmatpush.bf16.msra.mxu1 %v1985_v16  ;;  %v1936_v31 = vld [vmem:[#allocation7 + $0x240] sm:$0xf]  ;;  %v2305_v33 = vld [vmem:[#allocation7 + $0x254] sm:$0xf0]  ;;  %v1794_v37 = vld [vmem:[#allocation7 + $0x138] sm:$0xf0]  ;;  %v1745_v38 = vor.u32 %v2257_v30, %v1744_v29 }
  0x5f   : > { %1223 = vmatpush.bf16.msra.mxu2 %v2177_v17  ;;  %v2128_v34 = vld [vmem:[#allocation7 + $0x3c0] sm:$0xf]  ;;  %v2353_v35 = vld [vmem:[#allocation7 + $0x3d4] sm:$0xf0]  ;;  %1236 = vmatpush.bf16.msra.mxu3 %v1821_v32  ;;  %v1720_v39 = vld [vmem:[#allocation7 + $0x90] sm:$0xf]  ;;  %v1797_v41 = vor.u32 %v2266_v36, %v1794_v37  ;;  %v1937_v42 = vor.u32 %v2305_v33, %v1936_v31 }
  0x60   : > { %v2251_v40 = vld [vmem:[#allocation7 + $0xa4] sm:$0xf0]  ;;  %v2129_v43 = vor.u32 %v2353_v35, %v2128_v34  ;;  %v1912_v44 = vld [vmem:[#allocation7 + $0x210] sm:$0xf]  ;;  %v2260_v46 = vld [vmem:[#allocation7 + $0xf4] sm:$0xf] }
  0x61   : > { %1196 = vmatpush.bf16.msra.mxu0 %v1769_v24  ;;  %v2299_v45 = vld [vmem:[#allocation7 + $0x224] sm:$0xf0]  ;;  %v2104_v47 = vld [vmem:[#allocation7 + $0x390] sm:$0xf]  ;;  %v1770_v49 = vld [vmem:[#allocation7 + $0x108] sm:$0xf0]  ;;  %v1721_v51 = vor.u32 %v2251_v40, %v1720_v39 }
  0x62   : > { %1210 = vmatpush.bf16.msra.mxu1 %v1961_v27  ;;  %v2347_v48 = vld [vmem:[#allocation7 + $0x3a4] sm:$0xf0]  ;;  %v1773_v50 = vor.u32 %v2260_v46, %v1770_v49  ;;  %v2254_v52 = vld [vmem:[#allocation7 + $0xc4] sm:$0xf]  ;;  %v1746_v53 = vld [vmem:[#allocation7 + $0xd8] sm:$0xf0]  ;;  %v1913_v54 = vor.u32 %v2299_v45, %v1912_v44 }
  0x63   : > { %1224 = vmatpush.bf16.msra.mxu2 %v2153_v28  ;;  %1237 = vmatpush.bf16.msra.mxu3 %v1797_v41  ;;  %v2105_v55 = vor.u32 %v2347_v48, %v2104_v47  ;;  %v1696_v56 = vld [vmem:[#allocation7 + $0x60] sm:$0xf]  ;;  %v2245_v57 = vld [vmem:[#allocation7 + $0x74] sm:$0xf0]  ;;  %v1749_v62 = vor.u32 %v2254_v52, %v1746_v53  ;;  %v2248_v0 = vld [vmem:[#allocation7 + $0x94] sm:$0xf] }
  0x64   : > { %v1888_v58 = vld [vmem:[#allocation7 + $0x1e0] sm:$0xf]  ;;  %v2293_v59 = vld [vmem:[#allocation7 + $0x1f4] sm:$0xf0]  ;;  %v1697_v63 = vor.u32 %v2245_v57, %v1696_v56  ;;  %v1722_v1 = vld [vmem:[#allocation7 + $0xa8] sm:$0xf0] }
  0x65   : > { %1197 = vmatpush.bf16.msra.mxu0 %v1745_v38  ;;  %v2080_v60 = vld [vmem:[#allocation7 + $0x360] sm:$0xf]  ;;  %v2341_v61 = vld [vmem:[#allocation7 + $0x374] sm:$0xf0]  ;;  %v1889_v2 = vor.u32 %v2293_v59, %v1888_v58  ;;  %v1672_v4 = vld [vmem:[#allocation7 + $0x30] sm:$0xf]  ;;  %v1725_v11 = vor.u32 %v2248_v0, %v1722_v1 }
  0x66   : > { %1211 = vmatpush.bf16.msra.mxu1 %v1937_v42  ;;  %v2081_v3 = vor.u32 %v2341_v61, %v2080_v60  ;;  %v2239_v5 = vld [vmem:[#allocation7 + $0x44] sm:$0xf0]  ;;  %v1864_v6 = vld [vmem:[#allocation7 + $0x1b0] sm:$0xf]  ;;  %v1648_v10 = vld [vmem:[#allocation7] sm:$0xf] }
  0x67   : > { %1225 = vmatpush.bf16.msra.mxu2 %v2129_v43  ;;  %1238 = vmatpush.bf16.msra.mxu3 %v1773_v50  ;;  %v2287_v7 = vld [vmem:[#allocation7 + $0x1c4] sm:$0xf0]  ;;  %v2056_v8 = vld [vmem:[#allocation7 + $0x330] sm:$0xf]  ;;  %v1673_v12 = vor.u32 %v2239_v5, %v1672_v4  ;;  %v2233_v13 = vld [vmem:[#allocation7 + $0x14] sm:$0xf0] }
  0x68   : > { %v2335_v9 = vld [vmem:[#allocation7 + $0x344] sm:$0xf0]  ;;  %v2242_v14 = vld [vmem:[#allocation7 + $0x64] sm:$0xf]  ;;  %v1698_v15 = vld [vmem:[#allocation7 + $0x78] sm:$0xf0]  ;;  %v1865_v16 = vor.u32 %v2287_v7, %v1864_v6  ;;  %v1649_v28 = vor.u32 %v2233_v13, %v1648_v10 }
  0x69   : > { %1198 = vmatpush.bf16.msra.mxu0 %v1721_v51  ;;  %v2057_v17 = vor.u32 %v2335_v9, %v2056_v8  ;;  %v1840_v18 = vld [vmem:[#allocation7 + $0x180] sm:$0xf]  ;;  %v2281_v19 = vld [vmem:[#allocation7 + $0x194] sm:$0xf0]  ;;  %v2320_v20 = vld [vmem:[#allocation7 + $0x2d4] sm:$0xf]  ;;  %v1701_v26 = vor.u32 %v2242_v14, %v1698_v15 }
  0x6a   : > { %1212 = vmatpush.bf16.msra.mxu1 %v1913_v54  ;;  %v2010_v21 = vld [vmem:[#allocation7 + $0x2e8] sm:$0xf0]  ;;  %v2368_v22 = vld [vmem:[#allocation7 + $0x454] sm:$0xf]  ;;  %v2032_v24 = vld [vmem:[#allocation7 + $0x300] sm:$0xf]  ;;  %v1841_v32 = vor.u32 %v2281_v19, %v1840_v18 }
  0x6b   : > { %1226 = vmatpush.bf16.msra.mxu2 %v2105_v55  ;;  %1239 = vmatpush.bf16.msra.mxu3 %v1749_v62  ;;  %v2202_v23 = vld [vmem:[#allocation7 + $0x468] sm:$0xf0]  ;;  %v2329_v25 = vld [vmem:[#allocation7 + $0x314] sm:$0xf0]  ;;  %v2276_v29 = vld [vmem:[#allocation7 + $0x16c] sm:$0xf0]  ;;  %v2013_v33 = vor.u32 %v2320_v20, %v2010_v21 }
  0x6c   : > { %v1824_v27 = vld [vmem:[#allocation7 + $0x158] sm:$0xf]  ;;  %v2236_v30 = vld [vmem:[#allocation7 + $0x34] sm:$0xf]  ;;  %v1674_v31 = vld [vmem:[#allocation7 + $0x48] sm:$0xf0]  ;;  %v2205_v36 = vor.u32 %v2368_v22, %v2202_v23  ;;  %v2033_v37 = vor.u32 %v2329_v25, %v2032_v24 }
  0x6d   : > { %1199 = vmatpush.bf16.msra.mxu0 %v1697_v63  ;;  %v2314_v34 = vld [vmem:[#allocation7 + $0x2a4] sm:$0xf]  ;;  %v1986_v35 = vld [vmem:[#allocation7 + $0x2b8] sm:$0xf0]  ;;  %v1636_v39 = vld [vmem:[%s2822_s30] sm:$0xf]  ;;  %v1825_v41 = vor.u32 %v2276_v29, %v1824_v27  ;;  %v1677_v43 = vor.u32 %v2236_v30, %v1674_v31 }
  0x6e   : > { %1213 = vmatpush.bf16.msra.mxu1 %v1889_v2  ;;  %v2362_v38 = vld [vmem:[#allocation7 + $0x424] sm:$0xf]  ;;  %v2228_v40 = vld [vmem:[%s2822_s30 + $0x8] sm:$0xf0]  ;;  %v1800_v44 = vld [vmem:[#allocation7 + $0x128] sm:$0xf]  ;;  %v1989_v51 = vor.u32 %v2314_v34, %v1986_v35 }
  0x6f   : > { %1227 = vmatpush.bf16.msra.mxu2 %v2081_v3  ;;  %1240 = vmatpush.bf16.msra.mxu3 %v1725_v11  ;;  %v2178_v42 = vld [vmem:[#allocation7 + $0x438] sm:$0xf0]  ;;  %v2270_v45 = vld [vmem:[#allocation7 + $0x13c] sm:$0xf0]  ;;  %v2308_v46 = vld [vmem:[#allocation7 + $0x274] sm:$0xf]  ;;  %v2848_v50 = vor.u32 %v2228_v40, %v1636_v39 }
  0x70   : > { %v1962_v47 = vld [vmem:[#allocation7 + $0x288] sm:$0xf0]  ;;  %v2230_v48 = vld [vmem:[#allocation7 + $0x4] sm:$0xf]  ;;  %v1650_v49 = vld [vmem:[#allocation7 + $0x18] sm:$0xf0]  ;;  %v2181_v55 = vor.u32 %v2362_v38, %v2178_v42  ;;  %v1801_v56 = vor.u32 %v2270_v45, %v1800_v44 }
  0x71   : > { %1200 = vmatpush.bf16.msra.mxu0 %v1673_v12  ;;  %v2016_v52 = vld [vmem:[#allocation7 + $0x2d8] sm:$0xf]  ;;  %v2324_v53 = vld [vmem:[#allocation7 + $0x2ec] sm:$0xf0]  ;;  %v2227_v54 = vld [vmem:[%s2822_s30 + $0x4] sm:$0xf]  ;;  %v1653_v62 = vor.u32 %v2230_v48, %v1650_v49  ;;  %v1965_v4 = vor.u32 %v2308_v46, %v1962_v47 }
  0x72   : > { %1214 = vmatpush.bf16.msra.mxu1 %v1865_v16  ;;  %v1638_v57 = vld [vmem:[%s2822_s30 + $0xc] sm:$0xf0]  ;;  %v1644_v58 = vld [vmem:[%s2822_s30 + $0x8] sm:$0xf]  ;;  %v2229_v59 = vld [vmem:[%s2822_s30 + $0x10] sm:$0xf0]  ;;  %v2017_v3 = vor.u32 %v2324_v53, %v2016_v52 }
  0x73   : > { %1228 = vmatpush.bf16.msra.mxu2 %v2057_v17  ;;  %1241 = vmatpush.bf16.msra.mxu3 %v1701_v26  ;;  %v2356_v60 = vld [vmem:[#allocation7 + $0x3f4] sm:$0xf]  ;;  %v2154_v61 = vld [vmem:[#allocation7 + $0x408] sm:$0xf0]  ;;  %v2854_v63 = vor.u32 %v2227_v54, %v1638_v57  ;;  %v2856_v0 = vor.u32 %v2229_v59, %v1644_v58  ;;  %v1776_v1 = vld [vmem:[#allocation7 + $0xf8] sm:$0xf] }
  0x74   : > { %v2264_v2 = vld [vmem:[#allocation7 + $0x10c] sm:$0xf0]  ;;  %v1992_v5 = vld [vmem:[#allocation7 + $0x2a8] sm:$0xf]  ;;  %v2318_v6 = vld [vmem:[#allocation7 + $0x2bc] sm:$0xf0]  ;;  %v2157_v7 = vor.u32 %v2356_v60, %v2154_v61 }
  0x75   : > { %1201 = vmatpush.bf16.msra.mxu0 %v1649_v28  ;;  %v2302_v8 = vld [vmem:[#allocation7 + $0x244] sm:$0xf]  ;;  %v1938_v9 = vld [vmem:[#allocation7 + $0x258] sm:$0xf0]  ;;  %v1777_v10 = vor.u32 %v2264_v2, %v1776_v1  ;;  %v1752_v13 = vld [vmem:[#allocation7 + $0xc8] sm:$0xf]  ;;  %v1993_v15 = vor.u32 %v2318_v6, %v1992_v5 }
  0x76   : > { %1215 = vmatpush.bf16.msra.mxu1 %v1841_v32  ;;  %v2350_v11 = vld [vmem:[#allocation7 + $0x3c4] sm:$0xf]  ;;  %v2130_v12 = vld [vmem:[#allocation7 + $0x3d8] sm:$0xf0]  ;;  %v2258_v14 = vld [vmem:[#allocation7 + $0xdc] sm:$0xf0]  ;;  %v1941_v16 = vor.u32 %v2302_v8, %v1938_v9 }
  0x77   : > { %1229 = vmatpush.bf16.msra.mxu2 %v2033_v37  ;;  %1242 = vmatpush.bf16.msra.mxu3 %v1677_v43  ;;  %v1968_v17 = vld [vmem:[#allocation7 + $0x278] sm:$0xf]  ;;  %v2312_v18 = vld [vmem:[#allocation7 + $0x28c] sm:$0xf0]  ;;  %v2133_v19 = vor.u32 %v2350_v11, %v2130_v12  ;;  %v2296_v20 = vld [vmem:[#allocation7 + $0x214] sm:$0xf]  ;;  %v1753_v22 = vor.u32 %v2258_v14, %v1752_v13 }
  0x78   : > { %1202 = vmatmul.bf16.vlgmr.msra.gmra.mxu0 %v2848_v50  ;;  %v1914_v21 = vld [vmem:[#allocation7 + $0x228] sm:$0xf0]  ;;  %v2344_v23 = vld [vmem:[#allocation7 + $0x394] sm:$0xf]  ;;  %v1728_v25 = vld [vmem:[#allocation7 + $0x98] sm:$0xf]  ;;  %v1969_v27 = vor.u32 %v2312_v18, %v1968_v17 }
  0x79   : > { %1250 = vmatpush.bf16.msrb.mxu0 %v2013_v33  ;;  %1216 = vmatmul.bf16.vlgmr.msra.gmra.mxu1 %v2854_v63  ;;  %v2106_v24 = vld [vmem:[#allocation7 + $0x3a8] sm:$0xf0]  ;;  %v2252_v26 = vld [vmem:[#allocation7 + $0xac] sm:$0xf0]  ;;  %v1917_v28 = vor.u32 %v2296_v20, %v1914_v21  ;;  %v1944_v29 = vld [vmem:[#allocation7 + $0x248] sm:$0xf] }
  0x7a   : > { %1264 = vmatpush.bf16.msrb.mxu1 %v2205_v36  ;;  %1230 = vmatmul.bf16.vlgmr.msra.gmra.mxu2 %v2856_v0  ;;  %v2306_v30 = vld [vmem:[#allocation7 + $0x25c] sm:$0xf0]  ;;  %v2109_v31 = vor.u32 %v2344_v23, %v2106_v24  ;;  %v2290_v32 = vld [vmem:[#allocation7 + $0x1e4] sm:$0xf]  ;;  %v1890_v33 = vld [vmem:[#allocation7 + $0x1f8] sm:$0xf0]  ;;  %v1729_v34 = vor.u32 %v2252_v26, %v1728_v25 }
  0x7b   : > { %1278 = vmatpush.bf16.msrb.mxu2 %v1825_v41  ;;  %1243 = vmatpush.bf16.msra.mxu3 %v1653_v62  ;;  %v2338_v35 = vld [vmem:[#allocation7 + $0x364] sm:$0xf]  ;;  %v2082_v36 = vld [vmem:[#allocation7 + $0x378] sm:$0xf0]  ;;  %v1704_v37 = vld [vmem:[#allocation7 + $0x68] sm:$0xf]  ;;  %v1945_v39 = vor.u32 %v2306_v30, %v1944_v29  ;;  %v1893_v40 = vor.u32 %v2290_v32, %v1890_v33 }
  0x7c   : > { %v2246_v38 = vld [vmem:[#allocation7 + $0x7c] sm:$0xf0]  ;;  %v1920_v41 = vld [vmem:[#allocation7 + $0x218] sm:$0xf]  ;;  %v2300_v42 = vld [vmem:[#allocation7 + $0x22c] sm:$0xf0]  ;;  %v2085_v43 = vor.u32 %v2338_v35, %v2082_v36 }
  0x7d   : > { %1251 = vmatpush.bf16.msrb.mxu0 %v1989_v51  ;;  %v2284_v44 = vld [vmem:[#allocation7 + $0x1b4] sm:$0xf]  ;;  %v1866_v45 = vld [vmem:[#allocation7 + $0x1c8] sm:$0xf0]  ;;  %v1705_v46 = vor.u32 %v2246_v38, %v1704_v37  ;;  %v1680_v49 = vld [vmem:[#allocation7 + $0x38] sm:$0xf]  ;;  %v1921_v52 = vor.u32 %v2300_v42, %v1920_v41 }
  0x7e   : > { %1265 = vmatpush.bf16.msrb.mxu1 %v2181_v55  ;;  %1244 = vmatmul.bf16.vlgmr.msra.gmra.mxu3 %v2848_v50  ;;  %v2332_v47 = vld [vmem:[#allocation7 + $0x334] sm:$0xf]  ;;  %v2058_v48 = vld [vmem:[#allocation7 + $0x348] sm:$0xf0]  ;;  %v2240_v51 = vld [vmem:[#allocation7 + $0x4c] sm:$0xf0]  ;;  %v1869_v53 = vor.u32 %v2284_v44, %v1866_v45 }
  0x7f   : > { %1279 = vmatpush.bf16.msrb.mxu2 %v1801_v56  ;;  %1292 = vmatpush.bf16.msrb.mxu3 %v2017_v3  ;;  %v2278_v54 = vld [vmem:[#allocation7 + $0x184] sm:$0xf]  ;;  %v1896_v55 = vld [vmem:[#allocation7 + $0x1e8] sm:$0xf]  ;;  %v2294_v56 = vld [vmem:[#allocation7 + $0x1fc] sm:$0xf0]  ;;  %v2061_v57 = vor.u32 %v2332_v47, %v2058_v48  ;;  %v1681_v61 = vor.u32 %v2240_v51, %v1680_v49 }
  0x80   : > { %v1842_v58 = vld [vmem:[#allocation7 + $0x198] sm:$0xf0]  ;;  %v2326_v59 = vld [vmem:[#allocation7 + $0x304] sm:$0xf]  ;;  %v2208_v62 = vld [vmem:[#allocation7 + $0x458] sm:$0xf]  ;;  %v1897_v6 = vor.u32 %v2294_v56, %v1896_v55 }
  0x81   : > { %1252 = vmatpush.bf16.msrb.mxu0 %v1965_v4  ;;  %v2034_v60 = vld [vmem:[#allocation7 + $0x318] sm:$0xf0]  ;;  %v2372_v1 = vld [vmem:[#allocation7 + $0x46c] sm:$0xf0]  ;;  %v1826_v3 = vld [vmem:[#allocation7 + $0x170] sm:$0xf0] }
  0x82   : > { %1266 = vmatpush.bf16.msrb.mxu1 %v2157_v7  ;;  %v2273_v2 = vld [vmem:[#allocation7 + $0x15c] sm:$0xf]  ;;  %v1656_v4 = vld [vmem:[#allocation7 + $0x8] sm:$0xf]  ;;  %v2234_v5 = vld [vmem:[#allocation7 + $0x1c] sm:$0xf0]  ;;  %v1845_v7 = vor.u32 %v2278_v54, %v1842_v58  ;;  %v2209_v11 = vor.u32 %v2372_v1, %v2208_v62 }
  0x83   : > { %1280 = vmatpush.bf16.msrb.mxu2 %v1777_v10  ;;  %1293 = vmatpush.bf16.msrb.mxu3 %v1993_v15  ;;  %v2321_v8 = vld [vmem:[#allocation7 + $0x2dc] sm:$0xf]  ;;  %v2018_v9 = vld [vmem:[#allocation7 + $0x2f0] sm:$0xf0]  ;;  %v2037_v10 = vor.u32 %v2326_v59, %v2034_v60  ;;  %v1872_v12 = vld [vmem:[#allocation7 + $0x1b8] sm:$0xf]  ;;  %v1829_v14 = vor.u32 %v2273_v2, %v1826_v3  ;;  %v1657_v15 = vor.u32 %v2234_v5, %v1656_v4 }
  0x84   : > { %v2288_v13 = vld [vmem:[#allocation7 + $0x1cc] sm:$0xf0]  ;;  %v2366_v17 = vld [vmem:[#allocation7 + $0x43c] sm:$0xf0]  ;;  %v2021_v18 = vor.u32 %v2321_v8, %v2018_v9  ;;  %v1802_v20 = vld [vmem:[#allocation7 + $0x140] sm:$0xf0] }
  0x85   : > { %1253 = vmatpush.bf16.msrb.mxu0 %v1941_v16  ;;  %v2184_v16 = vld [vmem:[#allocation7 + $0x428] sm:$0xf]  ;;  %v1873_v21 = vor.u32 %v2288_v13, %v1872_v12  ;;  %v1994_v23 = vld [vmem:[#allocation7 + $0x2c0] sm:$0xf0]  ;;  %v2160_v25 = vld [vmem:[#allocation7 + $0x3f8] sm:$0xf] }
  0x86   : > { %1267 = vmatpush.bf16.msrb.mxu1 %v2133_v19  ;;  %v2267_v19 = vld [vmem:[#allocation7 + $0x12c] sm:$0xf]  ;;  %v2185_v24 = vor.u32 %v2366_v17, %v2184_v16  ;;  %v1848_v26 = vld [vmem:[#allocation7 + $0x188] sm:$0xf]  ;;  %v2360_v29 = vld [vmem:[#allocation7 + $0x40c] sm:$0xf0] }
  0x87   : > { %1281 = vmatpush.bf16.msrb.mxu2 %v1753_v22  ;;  %1294 = vmatpush.bf16.msrb.mxu3 %v1969_v27  ;;  %v2315_v22 = vld [vmem:[#allocation7 + $0x2ac] sm:$0xf]  ;;  %v2282_v27 = vld [vmem:[#allocation7 + $0x19c] sm:$0xf0]  ;;  %v2369_v30 = vld [vmem:[#allocation7 + $0x45c] sm:$0xf]  ;;  %v2161_v38 = vor.u32 %v2360_v29, %v2160_v25 }
  0x88   : > { %v1997_v32 = vor.u32 %v2315_v22, %v1994_v23  ;;  %v2261_v33 = vld [vmem:[#allocation7 + $0xfc] sm:$0xf]  ;;  %v1849_v35 = vor.u32 %v2282_v27, %v1848_v26  ;;  %v1970_v37 = vld [vmem:[#allocation7 + $0x290] sm:$0xf0]  ;;  %v2354_v42 = vld [vmem:[#allocation7 + $0x3dc] sm:$0xf0] }
  0x89   : > { %1254 = vmatpush.bf16.msrb.mxu0 %v1917_v28  ;;  %v1805_v28 = vor.u32 %v2267_v19, %v1802_v20  ;;  %v2309_v36 = vld [vmem:[#allocation7 + $0x27c] sm:$0xf]  ;;  %v2186_v44 = vld [vmem:[#allocation7 + $0x440] sm:$0xf0]  ;;  %v2303_v48 = vld [vmem:[#allocation7 + $0x24c] sm:$0xf] }
  0x8a   : > { %1268 = vmatpush.bf16.msrb.mxu1 %v2109_v31  ;;  %v2210_v31 = vld [vmem:[#allocation7 + $0x470] sm:$0xf0]  ;;  %v1973_v45 = vor.u32 %v2309_v36, %v1970_v37  ;;  %v1754_v47 = vld [vmem:[#allocation7 + $0xe0] sm:$0xf0]  ;;  %v2348_v55 = vld [vmem:[#allocation7 + $0x3ac] sm:$0xf0] }
  0x8b   : > { %1282 = vmatpush.bf16.msrb.mxu2 %v1729_v34  ;;  %1295 = vmatpush.bf16.msrb.mxu3 %v1945_v39  ;;  %v1778_v34 = vld [vmem:[#allocation7 + $0x110] sm:$0xf0]  ;;  %v2136_v39 = vld [vmem:[#allocation7 + $0x3c8] sm:$0xf]  ;;  %v1946_v49 = vld [vmem:[#allocation7 + $0x260] sm:$0xf0] }
  0x8c   : > { %v1781_v41 = vor.u32 %v2261_v33, %v1778_v34  ;;  %v2137_v51 = vor.u32 %v2354_v42, %v2136_v39  ;;  %v2357_v56 = vld [vmem:[#allocation7 + $0x3fc] sm:$0xf]  ;;  %v1949_v58 = vor.u32 %v2303_v48, %v1946_v49  ;;  %v1730_v60 = vld [vmem:[#allocation7 + $0xb0] sm:$0xf0]  ;;  %v2088_v2 = vld [vmem:[#allocation7 + $0x368] sm:$0xf] }
  0x8d   : > { %1255 = vmatpush.bf16.msrb.mxu0 %v1893_v40  ;;  %v2213_v40 = vor.u32 %v2369_v30, %v2210_v31  ;;  %v2249_v59 = vld [vmem:[#allocation7 + $0x9c] sm:$0xf]  ;;  %v1922_v62 = vld [vmem:[#allocation7 + $0x230] sm:$0xf0]  ;;  %v2342_v5 = vld [vmem:[#allocation7 + $0x37c] sm:$0xf0] }
  0x8e   : > { %1269 = vmatpush.bf16.msrb.mxu1 %v2085_v43  ;;  %v2363_v43 = vld [vmem:[#allocation7 + $0x42c] sm:$0xf]  ;;  %v1733_v4 = vor.u32 %v2249_v59, %v1730_v60  ;;  %v1898_v12 = vld [vmem:[#allocation7 + $0x200] sm:$0xf0]  ;;  %v2089_v13 = vor.u32 %v2342_v5, %v2088_v2  ;;  %v2336_v17 = vld [vmem:[#allocation7 + $0x34c] sm:$0xf0] }
  0x8f   : > { %1283 = vmatpush.bf16.msrb.mxu2 %v1705_v46  ;;  %1296 = vmatpush.bf16.msrb.mxu3 %v1921_v52  ;;  %v2255_v46 = vld [vmem:[#allocation7 + $0xcc] sm:$0xf]  ;;  %v2112_v52 = vld [vmem:[#allocation7 + $0x398] sm:$0xf]  ;;  %v2114_v19 = vld [vmem:[#allocation7 + $0x3b0] sm:$0xf0] }
  0x90   : > { %v1757_v54 = vor.u32 %v2255_v46, %v1754_v47  ;;  %v2113_v1 = vor.u32 %v2348_v55, %v2112_v52  ;;  %v2243_v9 = vld [vmem:[#allocation7 + $0x6c] sm:$0xf]  ;;  %v1682_v22 = vld [vmem:[#allocation7 + $0x50] sm:$0xf0]  ;;  %v2285_v23 = vld [vmem:[#allocation7 + $0x1bc] sm:$0xf] }
  0x91   : > { %1256 = vmatpush.bf16.msrb.mxu0 %v1869_v53  ;;  %v2189_v53 = vor.u32 %v2363_v43, %v2186_v44  ;;  %v2040_v26 = vld [vmem:[#allocation7 + $0x308] sm:$0xf]  ;;  %v2330_v27 = vld [vmem:[#allocation7 + $0x31c] sm:$0xf0]  ;;  %v1658_v31 = vld [vmem:[#allocation7 + $0x20] sm:$0xf0] }
  0x92   : > { %1270 = vmatpush.bf16.msrb.mxu1 %v2061_v57  ;;  %v2162_v57 = vld [vmem:[#allocation7 + $0x410] sm:$0xf0]  ;;  %v2090_v33 = vld [vmem:[#allocation7 + $0x380] sm:$0xf0]  ;;  %v2277_v36 = vld [vmem:[#allocation7 + $0x174] sm:$0xf0] }
  0x93   : > { %1284 = vmatpush.bf16.msrb.mxu2 %v1681_v61  ;;  %1297 = vmatpush.bf16.msrb.mxu3 %v1897_v6  ;;  %v2297_v61 = vld [vmem:[#allocation7 + $0x21c] sm:$0xf]  ;;  %v2165_v3 = vor.u32 %v2357_v56, %v2162_v57  ;;  %v2351_v6 = vld [vmem:[#allocation7 + $0x3cc] sm:$0xf]  ;;  %v2024_v37 = vld [vmem:[#allocation7 + $0x2e0] sm:$0xf] }
  0x94   : > { %v1925_v8 = vor.u32 %v2297_v61, %v1922_v62  ;;  %v2279_v39 = vld [vmem:[#allocation7 + $0x18c] sm:$0xf]  ;;  %v2216_v43 = vld [vmem:[#allocation7 + $0x460] sm:$0xf]  ;;  %v2373_v44 = vld [vmem:[#allocation7 + $0x474] sm:$0xf0] }
  0x95   : > { %1257 = vmatpush.bf16.msrb.mxu0 %v1845_v7  ;;  %v2138_v7 = vld [vmem:[#allocation7 + $0x3e0] sm:$0xf0]  ;;  %v2333_v47 = vld [vmem:[#allocation7 + $0x33c] sm:$0xf]  ;;  %v2066_v48 = vld [vmem:[#allocation7 + $0x350] sm:$0xf0] }
  0x96   : > { %1271 = vmatpush.bf16.msrb.mxu1 %v2037_v10  ;;  %v1706_v10 = vld [vmem:[#allocation7 + $0x80] sm:$0xf0]  ;;  %v1808_v52 = vld [vmem:[#allocation7 + $0x130] sm:$0xf]  ;;  %v2319_v56 = vld [vmem:[#allocation7 + $0x2c4] sm:$0xf0]  ;;  %v2069_v57 = vor.u32 %v2333_v47, %v2066_v48 }
  0x97   : > { %1285 = vmatpush.bf16.msrb.mxu2 %v1657_v15  ;;  %1298 = vmatpush.bf16.msrb.mxu3 %v1873_v21  ;;  %v2141_v15 = vor.u32 %v2351_v6, %v2138_v7  ;;  %v1709_v16 = vor.u32 %v2243_v9, %v1706_v10  ;;  %v2237_v21 = vld [vmem:[#allocation7 + $0x3c] sm:$0xf]  ;;  %v2000_v55 = vld [vmem:[#allocation7 + $0x2b0] sm:$0xf]  ;;  %v2367_v59 = vld [vmem:[#allocation7 + $0x444] sm:$0xf0] }
  0x98   : > { %1258 = vmatmul.bf16.vlgmr.msrb.gmra.mxu0 %v2854_v63  ;;  %v1685_v30 = vor.u32 %v2237_v21, %v1682_v22  ;;  %v1784_v61 = vld [vmem:[#allocation7 + $0x100] sm:$0xf]  ;;  %v2327_v62 = vld [vmem:[#allocation7 + $0x30c] sm:$0xf]  ;;  %v2001_v2 = vor.u32 %v2319_v56, %v2000_v55  ;;  %v1834_v5 = vld [vmem:[#allocation7 + $0x178] sm:$0xf0] }
  0x99   : > { %1306 = vmatpush.bf16.msra.mxu0 %v2209_v11  ;;  %1272 = vmatmul.bf16.vlgmr.msrb.gmra.mxu1 %v2856_v0  ;;  %v2291_v11 = vld [vmem:[#allocation7 + $0x1ec] sm:$0xf]  ;;  %v1976_v7 = vld [vmem:[#allocation7 + $0x280] sm:$0xf]  ;;  %v2307_v21 = vld [vmem:[#allocation7 + $0x264] sm:$0xf0] }
  0x9a   : > { %1320 = vmatpush.bf16.msra.mxu1 %v1829_v14  ;;  %1286 = vmatmul.bf16.vlgmr.msrb.gmra.mxu2 %v2848_v50  ;;  %v2064_v14 = vld [vmem:[#allocation7 + $0x338] sm:$0xf]  ;;  %v1901_v20 = vor.u32 %v2291_v11, %v1898_v12  ;;  %v2168_v10 = vld [vmem:[#allocation7 + $0x400] sm:$0xf]  ;;  %v2144_v22 = vld [vmem:[#allocation7 + $0x3d0] sm:$0xf] }
  0x9b   : > { %1334 = vmatpush.bf16.msra.mxu2 %v2021_v18  ;;  %1299 = vmatpush.bf16.msrb.mxu3 %v1849_v35  ;;  %v2345_v18 = vld [vmem:[#allocation7 + $0x39c] sm:$0xf]  ;;  %v2065_v25 = vor.u32 %v2336_v17, %v2064_v14  ;;  %v1832_v35 = vld [vmem:[#allocation7 + $0x160] sm:$0xf]  ;;  %v2361_v11 = vld [vmem:[#allocation7 + $0x414] sm:$0xf0] }
  0x9c   : > { %v2117_v29 = vor.u32 %v2345_v18, %v2114_v19  ;;  %v1833_v46 = vor.u32 %v2277_v36, %v1832_v35  ;;  %v2268_v17 = vld [vmem:[#allocation7 + $0x134] sm:$0xf]  ;;  %v1810_v18 = vld [vmem:[#allocation7 + $0x148] sm:$0xf0]  ;;  %v2169_v19 = vor.u32 %v2361_v11, %v2168_v10  ;;  %v2349_v35 = vld [vmem:[#allocation7 + $0x3b4] sm:$0xf0] }
  0x9d   : > { %1307 = vmatpush.bf16.msra.mxu0 %v2185_v24  ;;  %v1874_v24 = vld [vmem:[#allocation7 + $0x1d0] sm:$0xf0]  ;;  %v2343_v47 = vld [vmem:[#allocation7 + $0x384] sm:$0xf0]  ;;  %v1738_v55 = vld [vmem:[#allocation7 + $0xb8] sm:$0xf0] }
  0x9e   : > { %1321 = vmatpush.bf16.msra.mxu1 %v1805_v28  ;;  %1300 = vmatmul.bf16.vlgmr.msrb.gmra.mxu3 %v2854_v63  ;;  %v2231_v28 = vld [vmem:[#allocation7 + $0xc] sm:$0xf]  ;;  %v1877_v34 = vor.u32 %v2285_v23, %v1874_v24  ;;  %v2355_v23 = vld [vmem:[#allocation7 + $0x3e4] sm:$0xf0]  ;;  %v2026_v10 = vld [vmem:[#allocation7 + $0x2f8] sm:$0xf0] }
  0x9f   : > { %1335 = vmatpush.bf16.msra.mxu2 %v1997_v32  ;;  %1348 = vmatpush.bf16.msra.mxu3 %v2213_v40  ;;  %v2339_v32 = vld [vmem:[#allocation7 + $0x36c] sm:$0xf]  ;;  %v1850_v40 = vld [vmem:[#allocation7 + $0x1a0] sm:$0xf0]  ;;  %s2884_s21 = scalar_lea.vmem [#allocation10], %s2379_s25  ;;  %s2380_s24 = smul.u32 48, %s2713_s19 }
  0xa0   : > { %v2093_v42 = vor.u32 %v2339_v32, %v2090_v33  ;;  %v1928_v32 = vld [vmem:[#allocation7 + $0x220] sm:$0xf]  ;;  %v2301_v33 = vld [vmem:[#allocation7 + $0x234] sm:$0xf0]  ;;  %v2370_v11 = vld [vmem:[#allocation7 + $0x464] sm:$0xf] }
  0xa1   : > { %1308 = vmatpush.bf16.msra.mxu0 %v2161_v38  ;;  %v2325_v38 = vld [vmem:[#allocation7 + $0x2f4] sm:$0xf0]  ;;  %s1501_s23 = scalar_lea.hbm %s2938_s4, %s2380_s24  ;;  %s1502_s19 = sshll.u32 %s2884_s21, 4  ;;  %s1503_s19 = int_to_ptr.vmem [resolvable:$true] %s1502_s19 }
  0xa2   : > { %1322 = vmatpush.bf16.msra.mxu1 %v1781_v41  ;;  %v2041_v41 = vor.u32 %v2330_v27, %v2040_v26  ;;  %v2025_v49 = vor.u32 %v2325_v38, %v2024_v37  ;;  %v1813_v26 = vor.u32 %v2268_v17, %v1810_v18  ;;  %v1712_v37 = vld [vmem:[#allocation7 + $0x70] sm:$0xf]  ;;  %s1504_s29 = sshll.u32 %s1501_s23, 4  ;;  %s1489_s7 = scalar_lea.sflag [#allocation4], %s2818_s9  ;;  %s1505_s29 = int_to_ptr.hbm [resolvable:$true] %s1504_s29 }
  0xa3   : > { %1336 = vmatpush.bf16.msra.mxu2 %v1973_v45  ;;  %1349 = vmatpush.bf16.msra.mxu3 %v2189_v53  ;;  %v1661_v45 = vor.u32 %v2231_v28, %v1658_v31  ;;  %v2271_v53 = vld [vmem:[#allocation7 + $0x144] sm:$0xf0]  ;;  %v2253_v28 = vld [vmem:[#allocation7 + $0xb4] sm:$0xf0]  ;;  %v2145_v31 = vor.u32 %v2355_v23, %v2144_v22  ;;  %v2316_v23 = vld [vmem:[#allocation7 + $0x2b4] sm:$0xf] }
  0xa4   : > { %v1809_v60 = vor.u32 %v2271_v53, %v1808_v52  ;;  %v2241_v53 = vld [vmem:[#allocation7 + $0x54] sm:$0xf0]  ;;  %s2593_s20 = sshra.s32 %s1505_s29, 4  ;;  %s2599_s2 = scalar_lea.hbm %s2938_s4, 96  ;;  %s2594_s20 = int_to_ptr.hbm [resolvable:$true] %s2593_s20 }
  0xa5   : > { %1309 = vmatpush.bf16.msra.mxu0 %v2137_v51  ;;  %v1853_v51 = vor.u32 %v2279_v39, %v1850_v40  ;;  %v1929_v39 = vor.u32 %v2301_v33, %v1928_v32  ;;  %v2247_v40 = vld [vmem:[#allocation7 + $0x84] sm:$0xf0]  ;;  %v2310_v32 = vld [vmem:[#allocation7 + $0x284] sm:$0xf]  ;;  %v1978_v33 = vld [vmem:[#allocation7 + $0x298] sm:$0xf0]  ;;  %p2600_p9 = scmp.lt.s32.totalorder %s2594_s20, %s2938_s4 }
  0xa6   : > { %1323 = vmatpush.bf16.msra.mxu1 %v1757_v54  ;;  %v2217_v54 = vor.u32 %v2373_v44, %v2216_v43  ;;  %v1904_v44 = vld [vmem:[#allocation7 + $0x1f0] sm:$0xf]  ;;  %v1713_v48 = vor.u32 %v2247_v40, %v1712_v37  ;;  %v1981_v37 = vor.u32 %v2310_v32, %v1978_v33  ;;  %v1954_v40 = vld [vmem:[#allocation7 + $0x268] sm:$0xf0]  ;;  %s2595_s5 = scalar_lea.hbm %s2594_s20, 48 }
  0xa7   : > { %1337 = vmatpush.bf16.msra.mxu2 %v1949_v58  ;;  %1350 = vmatpush.bf16.msra.mxu3 %v2165_v3  ;;  %v2192_v58 = vld [vmem:[#allocation7 + $0x430] sm:$0xf]  ;;  %v2265_v3 = vld [vmem:[#allocation7 + $0x114] sm:$0xf0]  ;;  %p2596_p1 = scmp.ne.s32.totalorder %s2594_s20, %s2595_s5  ;;  %p2601_p10 = scmp.lt.s32.totalorder %s2599_s2, %s2595_s5 }
  0xa8   : > { %v2193_v6 = vor.u32 %v2367_v59, %v2192_v58  ;;  %v1785_v12 = vor.u32 %v2265_v3, %v1784_v61  ;;  %v2289_v58 = vld [vmem:[#allocation7 + $0x1d4] sm:$0xf0]  ;;  %v2072_v59 = vld [vmem:[#allocation7 + $0x340] sm:$0xf] }
  0xa9   : > { %1310 = vmatpush.bf16.msra.mxu0 %v2113_v1  ;;  %v2042_v1 = vld [vmem:[#allocation7 + $0x320] sm:$0xf0]  ;;  %v1449_v32 = vld [vmem:[%s2832_s28 + $0x18] sm:$0xff]  ;;  %p2597_p4 = pnand %p2596_p1, %p2761_p3  ;;  %p2602_p11 = por %p2601_p10, %p2600_p9 }
  0xaa   : > { %1324 = vmatpush.bf16.msra.mxu1 %v1733_v4  ;;  %v2274_v4 = vld [vmem:[#allocation7 + $0x164] sm:$0xf]  ;;  %v2045_v9 = vor.u32 %v2327_v62, %v2042_v1  ;;  %v1664_v62 = vld [vmem:[#allocation7 + $0x10] sm:$0xf]  ;;  %v2235_v1 = vld [vmem:[#allocation7 + $0x24] sm:$0xf0] }
  0xab   : > { %1338 = vmatpush.bf16.msra.mxu2 %v1925_v8  ;;  %1351 = vmatpush.bf16.msra.mxu3 %v2141_v15  ;;  %v2313_v8 = vld [vmem:[#allocation7 + $0x294] sm:$0xf0]  ;;  %v1837_v14 = vor.u32 %v2274_v4, %v1834_v5  ;;  %v2283_v5 = vld [vmem:[#allocation7 + $0x1a4] sm:$0xf0]  ;;  %p2598_p8 = pneg %p2597_p4 }
  0xac   : > { %v1977_v15 = vor.u32 %v2313_v8, %v1976_v7  ;;  %v1714_v7 = vld [vmem:[#allocation7 + $0x88] sm:$0xf0] }
  0xad   : > { %1311 = vmatpush.bf16.msra.mxu0 %v2089_v13  ;;  %v1760_v13 = vld [vmem:[#allocation7 + $0xd0] sm:$0xf]  ;;  %p2603_p2 = pnand %p2602_p11, %p2598_p8 }
  0xae   : > { %1325 = vmatpush.bf16.msra.mxu1 %v1709_v16  ;;  %v2259_v16 = vld [vmem:[#allocation7 + $0xe4] sm:$0xf0] }
  0xaf   : > { %1339 = vmatpush.bf16.msra.mxu2 %v1901_v20  ;;  %1352 = vmatpush.bf16.msra.mxu3 %v2117_v29  ;;  %v1952_v20 = vld [vmem:[#allocation7 + $0x250] sm:$0xf]  ;;  %v1761_v24 = vor.u32 %v2259_v16, %v1760_v13  ;;  %v2262_v29 = vld [vmem:[#allocation7 + $0x104] sm:$0xf] }
  0xb0   : > { %v1953_v27 = vor.u32 %v2307_v21, %v1952_v20  ;;  %v2048_v13 = vld [vmem:[#allocation7 + $0x310] sm:$0xf]  ;;  %v1690_v20 = vld [vmem:[#allocation7 + $0x58] sm:$0xf0] }
  0xb1   : > { %1312 = vmatpush.bf16.msra.mxu0 %v2065_v25  ;;  %v1736_v25 = vld [vmem:[#allocation7 + $0xa0] sm:$0xf] }
  0xb2   : > { %1326 = vmatpush.bf16.msra.mxu1 %v1685_v30  ;;  %v1786_v30 = vld [vmem:[#allocation7 + $0x118] sm:$0xf0]  ;;  %v1737_v36 = vor.u32 %v2253_v28, %v1736_v25  ;;  %v2364_v25 = vld [vmem:[#allocation7 + $0x434] sm:$0xf] }
  0xb3   : > { %1340 = vmatpush.bf16.msra.mxu2 %v1877_v34  ;;  %1353 = vmatpush.bf16.msra.mxu3 %v2093_v42  ;;  %v2120_v34 = vld [vmem:[#allocation7 + $0x3a0] sm:$0xf]  ;;  %v1789_v38 = vor.u32 %v2262_v29, %v1786_v30  ;;  %v1762_v42 = vld [vmem:[#allocation7 + $0xe8] sm:$0xf0]  ;;  %v2232_v29 = vld [vmem:[#allocation7 + $0x14] sm:$0xf] }
  0xb4   : > { %v2121_v43 = vor.u32 %v2349_v35, %v2120_v34  ;;  %v1666_v30 = vld [vmem:[#allocation7 + $0x28] sm:$0xf0]  ;;  %v2358_v34 = vld [vmem:[#allocation7 + $0x404] sm:$0xf]  ;;  %v2170_v35 = vld [vmem:[#allocation7 + $0x418] sm:$0xf0] }
  0xb5   : > { %1313 = vmatpush.bf16.msra.mxu0 %v2041_v41  ;;  %v2256_v41 = vld [vmem:[#allocation7 + $0xd4] sm:$0xf] }
  0xb6   : > { %1327 = vmatpush.bf16.msra.mxu1 %v1661_v45  ;;  %v2295_v45 = vld [vmem:[#allocation7 + $0x204] sm:$0xf0] }
  0xb7   : > { %1341 = vmatpush.bf16.msra.mxu2 %v1853_v51  ;;  %1354 = vmatpush.bf16.msra.mxu3 %v2069_v57  ;;  %v1765_v51 = vor.u32 %v2256_v41, %v1762_v42  ;;  %v1905_v52 = vor.u32 %v2295_v45, %v1904_v44  ;;  %v1880_v57 = vld [vmem:[#allocation7 + $0x1c0] sm:$0xf]  ;;  %v2352_v41 = vld [vmem:[#allocation7 + $0x3d4] sm:$0xf]  ;;  %v2146_v42 = vld [vmem:[#allocation7 + $0x3e8] sm:$0xf0] }
  0xb8   : > { %1314 = vmatmul.bf16.vlgmr.msra.gmra.mxu0 %v2856_v0  ;;  %v1881_v4 = vor.u32 %v2289_v58, %v1880_v57  ;;  %v2149_v44 = vor.u32 %v2352_v41, %v2146_v42  ;;  %v2298_v45 = vld [vmem:[#allocation7 + $0x224] sm:$0xf] }
  0xb9   : > { %1362 = vmatpush.bf16.msrb.mxu0 %v1833_v46  ;;  %1328 = vmatmul.bf16.vlgmr.msra.gmra.mxu1 %v2848_v50  ;;  %v2096_v46 = vld [vmem:[#allocation7 + $0x370] sm:$0xf]  ;;  %v2286_v58 = vld [vmem:[#allocation7 + $0x1c4] sm:$0xf] }
  0xba   : > { %1376 = vmatpush.bf16.msrb.mxu1 %v2025_v49  ;;  %1342 = vmatmul.bf16.vlgmr.msra.gmra.mxu2 %v2854_v63  ;;  %v1688_v49 = vld [vmem:[#allocation7 + $0x40] sm:$0xf]  ;;  %v2097_v56 = vor.u32 %v2343_v47, %v2096_v46  ;;  %v1930_v46 = vld [vmem:[#allocation7 + $0x238] sm:$0xf0]  ;;  %v2346_v47 = vld [vmem:[#allocation7 + $0x3a4] sm:$0xf] }
  0xbb   : > { %1390 = vmatpush.bf16.msrb.mxu2 %v2217_v54  ;;  %1355 = vmatpush.bf16.msra.mxu3 %v2045_v9  ;;  %v2250_v54 = vld [vmem:[#allocation7 + $0xa4] sm:$0xf]  ;;  %v1689_v61 = vor.u32 %v2241_v53, %v1688_v49  ;;  %v1933_v49 = vor.u32 %v2298_v45, %v1930_v46  ;;  %v1906_v53 = vld [vmem:[#allocation7 + $0x208] sm:$0xf0] }
  0xbc   : > { %v1741_v3 = vor.u32 %v2250_v54, %v1738_v55  ;;  %v2322_v9 = vld [vmem:[#allocation7 + $0x2e4] sm:$0xf]  ;;  %v2340_v54 = vld [vmem:[#allocation7 + $0x374] sm:$0xf]  ;;  %v2098_v55 = vld [vmem:[#allocation7 + $0x388] sm:$0xf0] }
  0xbd   : > { %1363 = vmatpush.bf16.msrb.mxu0 %v1809_v60  ;;  %v2337_v60 = vld [vmem:[#allocation7 + $0x354] sm:$0xf0]  ;;  %v2029_v18 = vor.u32 %v2322_v9, %v2026_v10  ;;  %v2101_v57 = vor.u32 %v2340_v54, %v2098_v55  ;;  %v2876_v9 = vld [vmem:[#allocation8] sm:$0x3f] }
  0xbe   : > { %1377 = vmatpush.bf16.msrb.mxu1 %v2001_v2  ;;  %1356 = vmatmul.bf16.vlgmr.msra.gmra.mxu3 %v2856_v0  ;;  %v1856_v2 = vld [vmem:[#allocation7 + $0x190] sm:$0xf]  ;;  %v2073_v8 = vor.u32 %v2337_v60, %v2072_v59  ;;  %v1882_v59 = vld [vmem:[#allocation7 + $0x1d8] sm:$0xf0]  ;;  %v2334_v60 = vld [vmem:[#allocation7 + $0x344] sm:$0xf] }
  0xbf   : > { %1391 = vmatpush.bf16.msrb.mxu2 %v2193_v6  ;;  %1404 = vmatpush.bf16.msrb.mxu3 %v1837_v14  ;;  %v2244_v6 = vld [vmem:[#allocation7 + $0x74] sm:$0xf]  ;;  %v2331_v14 = vld [vmem:[#allocation7 + $0x324] sm:$0xf0]  ;;  %v1857_v17 = vor.u32 %v2283_v5, %v1856_v2  ;;  %v1858_v2 = vld [vmem:[#allocation7 + $0x1a8] sm:$0xf0] }
  0xc0   : > { %v1717_v16 = vor.u32 %v2244_v6, %v1714_v7  ;;  %v2049_v22 = vor.u32 %v2331_v14, %v2048_v13  ;;  %v446_v10 = vperm.slane %v2876_v9, 0 }
  0xc1   : > { %1364 = vmatpush.bf16.msrb.mxu0 %v1785_v12  ;;  %v2218_v12 = vld [vmem:[#allocation7 + $0x478] sm:$0xf0] }
  0xc2   : > { %1378 = vmatpush.bf16.msrb.mxu1 %v1977_v15  ;;  %v1665_v15 = vor.u32 %v2235_v1, %v1664_v62  ;;  %v2221_v21 = vor.u32 %v2370_v11, %v2218_v12  ;;  %v2280_v1 = vld [vmem:[#allocation7 + $0x194] sm:$0xf] }
  0xc3   : > { %1392 = vmatpush.bf16.msrb.mxu2 %v2169_v19  ;;  %1405 = vmatpush.bf16.msrb.mxu3 %v1813_v26  ;;  %v2238_v19 = vld [vmem:[#allocation7 + $0x44] sm:$0xf]  ;;  %v2194_v26 = vld [vmem:[#allocation7 + $0x448] sm:$0xf0]  ;;  %v1861_v5 = vor.u32 %v2280_v1, %v1858_v2 }
  0xc5   : > { %1365 = vmatpush.bf16.msrb.mxu0 %v1761_v24  ;;  %v2002_v24 = vld [vmem:[#allocation7 + $0x2c8] sm:$0xf0] }
  0xc6   : > { %1379 = vmatpush.bf16.msrb.mxu1 %v1953_v27  ;;  %v1693_v27 = vor.u32 %v2238_v19, %v1690_v20  ;;  %v2005_v28 = vor.u32 %v2316_v23, %v2002_v24 }
  0xc7   : > { %1393 = vmatpush.bf16.msrb.mxu2 %v2145_v31  ;;  %1406 = vmatpush.bf16.msrb.mxu3 %v1789_v38  ;;  %v2197_v31 = vor.u32 %v2364_v25, %v2194_v26  ;;  %v2173_v38 = vor.u32 %v2358_v34, %v2170_v35 }
  0xc9   : > { %1366 = vmatpush.bf16.msrb.mxu0 %v1737_v36  ;;  %v1669_v36 = vor.u32 %v2232_v29, %v1666_v30 }
  0xca   : > { %1380 = vmatpush.bf16.msrb.mxu1 %v1929_v39  ;;  %v2304_v39 = vld [vmem:[#allocation7 + $0x254] sm:$0xf] }
  0xcb   : > { %1394 = vmatpush.bf16.msrb.mxu2 %v2121_v43  ;;  %1407 = vmatpush.bf16.msrb.mxu3 %v1765_v51  ;;  %v1957_v43 = vor.u32 %v2304_v39, %v1954_v40  ;;  %v1459_v39 = vunpack.c.h.bf16 %v1449_v32 }
  0xcd   : > { %1367 = vmatpush.bf16.msrb.mxu0 %v1713_v48  ;;  %v2122_v48 = vld [vmem:[#allocation7 + $0x3b8] sm:$0xf0] }
  0xce   : > { %1381 = vmatpush.bf16.msrb.mxu1 %v1905_v52  ;;  %v2125_v51 = vor.u32 %v2346_v47, %v2122_v48  ;;  %v2292_v52 = vld [vmem:[#allocation7 + $0x1f4] sm:$0xf]  ;;  %v448_v47 = vperm.slane %v2876_v9, 2 }
  0xcf   : > { %1395 = vmatpush.bf16.msrb.mxu2 %v2097_v56  ;;  %1408 = vmatpush.bf16.msrb.mxu3 %v1741_v3  ;;  %v1909_v56 = vor.u32 %v2292_v52, %v1906_v53  ;;  %v2328_v3 = vld [vmem:[#allocation7 + $0x314] sm:$0xf] }
  0xd1   : > { %1368 = vmatpush.bf16.msrb.mxu0 %v1689_v61  ;;  %v2074_v61 = vld [vmem:[#allocation7 + $0x358] sm:$0xf0] }
  0xd2   : > { %1382 = vmatpush.bf16.msrb.mxu1 %v1881_v4  ;;  %v2077_v62 = vor.u32 %v2334_v60, %v2074_v61  ;;  %v2050_v4 = vld [vmem:[#allocation7 + $0x328] sm:$0xf0] }
  0xd3   : > { %1396 = vmatpush.bf16.msrb.mxu2 %v2073_v8  ;;  %1409 = vmatpush.bf16.msrb.mxu3 %v1717_v16  ;;  %v2053_v6 = vor.u32 %v2328_v3, %v2050_v4 }
  0xd5   : > { %1369 = vmatpush.bf16.msrb.mxu0 %v1665_v15  ;;  %v447_v15 = vperm.slane %v2876_v9, 1 }
  0xd6   : > { %1383 = vmatpush.bf16.msrb.mxu1 %v1857_v17 }
  0xd7   : > { %1397 = vmatpush.bf16.msrb.mxu2 %v2049_v22  ;;  %1410 = vmatpush.bf16.msrb.mxu3 %v1693_v27 }
  0xd8   : > { %1370 = vmatmul.bf16.vlgmr.msrb.gmra.mxu0 %v2848_v50 }
  0xd9   : > { %1418 = vmatpush.bf16.msra.mxu0 %v2029_v18  ;;  %1384 = vmatmul.bf16.vlgmr.msrb.gmra.mxu1 %v2854_v63  ;;  %v1446_v18 = vld [vmem:[%s2832_s28] sm:$0xff] }
  0xda   : > { %1432 = vmatpush.bf16.msra.mxu1 %v2221_v21  ;;  %1398 = vmatmul.bf16.vlgmr.msrb.gmra.mxu2 %v2856_v0  ;;  %v1452_v20 = vunpack.c.l.bf16 %v1446_v18  ;;  %v1453_v24 = vunpack.c.h.bf16 %v1446_v18 }
  0xdb   : > { %1411 = vmatpush.bf16.msrb.mxu3 %v1669_v36  ;;  %v1458_v36 = vunpack.c.l.bf16 %v1449_v32 }
  0xdd   : > { %1419 = vmatpush.bf16.msra.mxu0 %v2005_v28 }
  0xde   : > { %1433 = vmatpush.bf16.msra.mxu1 %v2197_v31  ;;  %1412 = vmatmul.bf16.vlgmr.msrb.gmra.mxu3 %v2848_v50  ;;  %v1885_v50 = vor.u32 %v2286_v58, %v1882_v59 }
  0xe1   : > { %1420 = vmatpush.bf16.msra.mxu0 %v1981_v37 }
  0xe2   : > { %1434 = vmatpush.bf16.msra.mxu1 %v2173_v38 }
  0xe5   : > { %1421 = vmatpush.bf16.msra.mxu0 %v1957_v43 }
  0xe6   : > { %1435 = vmatpush.bf16.msra.mxu1 %v2149_v44 }
  0xe9   : > { %1422 = vmatpush.bf16.msra.mxu0 %v1933_v49 }
  0xea   : > { %1436 = vmatpush.bf16.msra.mxu1 %v2125_v51  ;;  %v449_v51 = vperm.slane %v2876_v9, 3 }
  0xed   : > { %1423 = vmatpush.bf16.msra.mxu0 %v1909_v56 }
  0xee   : > { %1437 = vmatpush.bf16.msra.mxu1 %v2101_v57  ;;  %v1447_v57 = vld [vmem:[%s2832_s28 + $0x8] sm:$0xff] }
  0xef   : > { %v1454_v61 = vunpack.c.l.bf16 %v1447_v57 }
  0xf1   : > { %1424 = vmatpush.bf16.msra.mxu0 %v1885_v50 }
  0xf2   : > { %1438 = vmatpush.bf16.msra.mxu1 %v2077_v62  ;;  %v1455_v62 = vunpack.c.h.bf16 %v1447_v57 }
  0xf5   : > { %1425 = vmatpush.bf16.msra.mxu0 %v1861_v5  ;;  %v1203_v7 = vpop.f32.mrf.mxu0 }
  0xf6   : > { %1439 = vmatpush.bf16.msra.mxu1 %v2053_v6  ;;  %v1217_v8 = vpop.f32.mrf.mxu1  ;;  %v1204_v12 = vadd.f32 %v1203_v7, %v446_v10 }
  0xf8   : > { %1426 = vmatmul.bf16.vlgmr.msra.gmra.mxu0 %v2854_v63  ;;  %v1218_v16 = vadd.f32 %v1217_v8, %v1204_v12  ;;  %v1450_v8 = vld [vmem:[%s2832_s28 + $0x20] sm:$0xff] }
  0xf9   : > { %1440 = vmatmul.bf16.vlgmr.msra.gmra.mxu1 %v2856_v0 }
  0xfd   : > { %v1205_v11 = vpop.f32.mrf.mxu0  ;;  %v1231_v17 = vpop.f32.mrf.mxu2 }
  0xfe   : > { %v1219_v13 = vpop.f32.mrf.mxu1  ;;  %v1232_v63 = vadd.f32 %v1231_v17, %v1218_v16  ;;  %v1206_v21 = vadd.f32 %v1205_v11, %v446_v10 }
 0x100   : > { %v1464_v26 = vadd.f32 %v1452_v20, %v1232_v63  ;;  %v1220_v28 = vadd.f32 %v1219_v13, %v1206_v21  ;;  %v450_v21 = vperm.slane %v2876_v9, 4 }
 0x101   : > { %v1245_v14 = vpop.f32.mrf.mxu3 }
 0x102   : > { %v1246_v19 = vadd.f32 %v1245_v14, %v447_v15  ;;  %v1460_v14 = vunpack.c.l.bf16 %v1450_v8 }
 0x105   : > { %v1233_v31 = vpop.f32.mrf.mxu2 }
 0x106   : > { %v1234_v35 = vadd.f32 %v1233_v31, %v1220_v28 }
 0x108   : > { %v1470_v41 = vadd.f32 %v1458_v36, %v1234_v35 }
 0x109   : > { %v1247_v25 = vpop.f32.mrf.mxu3 }
 0x10a   : > { %v1248_v30 = vadd.f32 %v1247_v25, %v447_v15  ;;  %v1461_v15 = vunpack.c.h.bf16 %v1450_v8  ;;  %v451_v25 = vperm.slane %v2876_v9, 5 }
 0x115   : > { %v1259_v0 = vpop.f32.mrf.mxu0 }
 0x116   : > { %v1260_v22 = vadd.f32 %v1259_v0, %v1246_v19  ;;  %v1273_v23 = vpop.f32.mrf.mxu1 }
 0x118   : > { %v1274_v27 = vadd.f32 %v1273_v23, %v1260_v22 }
 0x11a   : > { %v1465_v29 = vadd.f32 %v1453_v24, %v1274_v27 }
 0x11c   : > { %v1476_v33 = vpack.c.bf16 %v1465_v29, %v1464_v26  ;;  %v1448_v29 = vld [vmem:[%s2832_s28 + $0x10] sm:$0xff] }
 0x11d   : > { %v1261_v34 = vpop.f32.mrf.mxu0  ;;  %v1287_v44 = vpop.f32.mrf.mxu2  ;;  %v1456_v31 = vunpack.c.l.bf16 %v1448_v29 }
 0x11e   : > { %1482 = vst [vmem:[%s2884_s21] sm:$0xff] %v1476_v33  ;;  %v1262_v37 = vadd.f32 %v1261_v34, %v1248_v30  ;;  %v1275_v38 = vpop.f32.mrf.mxu1  ;;  %v1288_v49 = vadd.f32 %v1287_v44, %v448_v47 }
 0x120   : > { %v1276_v40 = vadd.f32 %v1275_v38, %v1262_v37  ;;  %v1457_v37 = vunpack.c.h.bf16 %v1448_v29 }
 0x121   : > { %v1301_v45 = vpop.f32.mrf.mxu3 }
 0x122   : > { %v1471_v42 = vadd.f32 %v1459_v39, %v1276_v40  ;;  %v1302_v54 = vadd.f32 %v1301_v45, %v1288_v49 }
 0x124   : > { %v1479_v43 = vpack.c.bf16 %v1471_v42, %v1470_v41 }
 0x125   : > { %v1289_v46 = vpop.f32.mrf.mxu2 }
 0x126   : > { %1485 = vst [vmem:[%s2884_s21 + $0x18] sm:$0xff] %v1479_v43  ;;  %v1290_v58 = vadd.f32 %v1289_v46, %v448_v47  ;;  %v1451_v43 = vld [vmem:[%s2832_s28 + $0x28] sm:$0xff] }
 0x129   : > { %v1303_v52 = vpop.f32.mrf.mxu3 }
 0x12a   : > { %v1304_v2 = vadd.f32 %v1303_v52, %v1290_v58 }
 0x135   : > { %v1315_v53 = vpop.f32.mrf.mxu0 }
 0x136   : > { %v1329_v48 = vpop.f32.mrf.mxu1  ;;  %v1316_v60 = vadd.f32 %v1315_v53, %v1302_v54 }
 0x137   : > { %v1330_v55 = vadd.f32 %v1329_v48, %v449_v51  ;;  %v1462_v48 = vunpack.c.l.bf16 %v1451_v43 }
 0x138   : > { %v1466_v3 = vadd.f32 %v1454_v61, %v1316_v60 }
 0x13d   : > { %v1343_v56 = vpop.f32.mrf.mxu2  ;;  %v1317_v7 = vpop.f32.mrf.mxu0 }
 0x13e   : > { %v1344_v59 = vadd.f32 %v1343_v56, %v1330_v55  ;;  %v1331_v50 = vpop.f32.mrf.mxu1  ;;  %v1318_v13 = vadd.f32 %v1317_v7, %v1304_v2 }
 0x13f   : > { %v1332_v5 = vadd.f32 %v1331_v50, %v449_v51  ;;  %v1463_v51 = vunpack.c.h.bf16 %v1451_v43 }
 0x140   : > { %v1472_v17 = vadd.f32 %v1460_v14, %v1318_v13 }
 0x141   : > { %v1357_v1 = vpop.f32.mrf.mxu3 }
 0x142   : > { %v1358_v4 = vadd.f32 %v1357_v1, %v1344_v59 }
 0x144   : > { %v1467_v10 = vadd.f32 %v1455_v62, %v1358_v4 }
 0x145   : > { %v1345_v6 = vpop.f32.mrf.mxu2 }
 0x146   : > { %v1477_v11 = vpack.c.bf16 %v1467_v10, %v1466_v3  ;;  %v1346_v12 = vadd.f32 %v1345_v6, %v1332_v5 }
 0x148   : > { %1483 = vst [vmem:[%s2884_s21 + $0x8] sm:$0xff] %v1477_v11 }
 0x149   : > { %v1359_v16 = vpop.f32.mrf.mxu3 }
 0x14a   : > { %v1360_v18 = vadd.f32 %v1359_v16, %v1346_v12 }
 0x14c   : > { %v1473_v19 = vadd.f32 %v1461_v15, %v1360_v18 }
 0x14e   : > { %v1480_v63 = vpack.c.bf16 %v1473_v19, %v1472_v17 }
 0x150   : > { %1486 = vst [vmem:[%s2884_s21 + $0x20] sm:$0xff] %v1480_v63 }
 0x155   : > { %v1371_v20 = vpop.f32.mrf.mxu0 }
 0x156   : > { %v1385_v0 = vpop.f32.mrf.mxu1  ;;  %v1372_v23 = vadd.f32 %v1371_v20, %v450_v21 }
 0x158   : > { %v1386_v28 = vadd.f32 %v1385_v0, %v1372_v23 }
 0x15d   : > { %v1373_v22 = vpop.f32.mrf.mxu0  ;;  %v1399_v27 = vpop.f32.mrf.mxu2 }
 0x15e   : > { %v1387_v24 = vpop.f32.mrf.mxu1  ;;  %v1400_v33 = vadd.f32 %v1399_v27, %v1386_v28  ;;  %v1374_v34 = vadd.f32 %v1373_v22, %v450_v21 }
 0x160   : > { %v1468_v40 = vadd.f32 %v1456_v31, %v1400_v33  ;;  %v1388_v9 = vadd.f32 %v1387_v24, %v1374_v34 }
 0x161   : > { %v1413_v26 = vpop.f32.mrf.mxu3 }
 0x162   : > { %v1414_v30 = vadd.f32 %v1413_v26, %v451_v25 }
 0x165   : > { %v1401_v42 = vpop.f32.mrf.mxu2 }
 0x166   : > { %v1402_v47 = vadd.f32 %v1401_v42, %v1388_v9 }
 0x168   : > { %v1474_v54 = vadd.f32 %v1462_v48, %v1402_v47 }
 0x169   : > { %v1415_v39 = vpop.f32.mrf.mxu3 }
 0x16a   : > { %v1416_v44 = vadd.f32 %v1415_v39, %v451_v25 }
 0x175   : > { %v1427_v32 = vpop.f32.mrf.mxu0 }
 0x176   : > { %v1428_v35 = vadd.f32 %v1427_v32, %v1414_v30  ;;  %v1441_v36 = vpop.f32.mrf.mxu1 }
 0x178   : > { %v1442_v38 = vadd.f32 %v1441_v36, %v1428_v35 }
 0x17a   : > { %v1469_v41 = vadd.f32 %v1457_v37, %v1442_v38 }
 0x17c   : > { %v1478_v45 = vpack.c.bf16 %v1469_v41, %v1468_v40 }
 0x17d   : > { %v1429_v46 = vpop.f32.mrf.mxu0 }
 0x17e   : > { %1484 = vst [vmem:[%s2884_s21 + $0x10] sm:$0xff] %v1478_v45  ;;  %v1430_v49 = vadd.f32 %v1429_v46, %v1416_v44  ;;  %v1443_v52 = vpop.f32.mrf.mxu1 }
 0x180   : > { %v1444_v53 = vadd.f32 %v1443_v52, %v1430_v49 }
 0x182   : > { %v1475_v55 = vadd.f32 %v1463_v51, %v1444_v53 }
 0x184   : > { %v1481_v56 = vpack.c.bf16 %v1475_v55, %v1474_v54 }
 0x186   : > { %1487 = vst [vmem:[%s2884_s21 + $0x28] sm:$0xff] %v1481_v56 }
 0x187   : > { %2606 = shalt.err (!%p2603_p2)
}
 0x188   : > { %s2665_s9 = smov 384   ;;  %s2666_s0 = smov 24  }
 0x189   : > { %2393 = dma.vmem_to_hbm [thread:$0]  (%p2761_p3), %s1503_s19, 768, %s1505_s29, %s1489_s7, %s2665_s9, %s2665_s9, %s2666_s0  }
 0x18a PF: > { %s1519_s30 = sand.u32 1, %s2645_s15   ;;  %p2955_p12 = scmp.ge.s32.totalorder %s2657_s18, 2 }
 0x18b   : > { %s1520_s26 = scalar_lea.sflag [#allocation4], %s1519_s30 }
 0x18c   : > { %p2410_p13 = pnand %p2955_p12, %p2727_p6 }
 0x18e   : > { %p2411_p0 = pneg %p2410_p13 }
 0x190   : > { %2640 = dma.done.wait (%p2411_p0), %s1520_s26, 768  }
 0x191   : > { %2642 = vsyncadd (%p2411_p0), %s1520_s26, 4294966528  ;;  %s2956_s25 = sld [smem:[#allocation16_spill]]  ;;  %p21_p5 = scmp.ge.s32.totalorder %s2751_s10, 4  }
 0x192   : > { %s2957_s15 = smov %s2649_s16  ;;  %s2958_s16 = smov %s2653_s17 }
 0x193   : > { %s2960_s18 = smov %s2751_s10  ;;  %23 = sbr.rel (!%p21_p5) target bundleno = 12 (0xc), region = 102 }
 0x197   : > { %s2959_s17 = smov %s2956_s25 }
 0x198   :  { %1526 = vsyncpa [#allocation3], 1 }
 0x199   :  { %1528 = vsyncpa [#allocation3 + $0x1], 1 }
 0x19a   :  { %1529 = vsyncpa [#allocation6], 1 }
 0x19b   :  { %1531 = vsyncpa [#allocation6 + $0x1], 1 }
 0x19c   :  { %1532 = vsyncpa [#allocation9], 1 }
 0x19d   :  { %1533 = vsyncpa [#allocation4], 1 }
 0x19e   :  { %1535 = vsyncpa [#allocation4 + $0x1], 1 }

</bundles_post_ra>
